<compile_context>
chip_gen: v7x
topology: tpu7x:2x2x1
jax: 0.10.0
libtpu: 0.0.40
codegen_flags: <defaults>
</compile_context>

<pallas_src>
import jax
import jax.numpy as jnp
from jax.experimental import pallas as pl
from jax.experimental.pallas import tpu as pltpu


# ----------------------------- helpers --------------------------------

def _round_up(x, m):
    return ((x + m - 1) // m) * m


def _pick_tile_m(m):
    """Pick an M tile: cap at 512 rows, aim for >= 2 grid steps (v7x megacore)."""
    half = -(-m // 2)                      # cdiv(m, 2)
    tile = min(512, _round_up(half, 8))
    return max(8, tile)


# ----------------------------- Pallas kernel --------------------------------

def _prob_kernel(logits_ref, posmap_ref, prob_ref):
    """prob = sigmoid(logits) @ pos_map_norm_padded.

    logits_ref : [TILE_M, T]      bf16
    posmap_ref : [T, C_pad]       bf16   (resident across the grid)
    prob_ref   : [TILE_M, C_pad]  f32    (lane-dense, unmasked stores)
    """
    # Upcast for sigmoid (v5e EUP/VPU have no bf16), cast back to bf16 for the MXU.
    logits_f32 = logits_ref[...].astype(jnp.float32)
    p_tok = jax.nn.sigmoid(logits_f32).astype(jnp.bfloat16)
    prob_ref[...] = jnp.dot(p_tok, posmap_ref[...],
                            preferred_element_type=jnp.float32)


def _prob_to_label_flat(logits_flat_bf16, posmap_t_pad_bf16, tile_m):
    """logits_flat_bf16: [M_pad, T] bf16; posmap_t_pad_bf16: [T, C_pad] bf16 -> [M_pad, C_pad] f32."""
    m_pad, t = logits_flat_bf16.shape
    c_pad = posmap_t_pad_bf16.shape[1]
    grid_m = m_pad // tile_m
    return pl.pallas_call(
        _prob_kernel,
        out_shape=jax.ShapeDtypeStruct((m_pad, c_pad), jnp.float32),
        grid_spec=pltpu.PrefetchScalarGridSpec(
            num_scalar_prefetch=0,
            grid=(grid_m,),
            in_specs=[
                pl.BlockSpec((tile_m, t), lambda i: (i, 0)),
                pl.BlockSpec((t, c_pad), lambda i: (0, 0)),   # resident weight tile
            ],
            out_specs=pl.BlockSpec((tile_m, c_pad), lambda i: (i, 0)),
        ),
        compiler_params=pltpu.CompilerParams(
            dimension_semantics=("parallel",)),
    )(logits_flat_bf16, posmap_t_pad_bf16)


# ----------------------------- PostProcess module ------------------------------

class PostProcessPallas:
    """JAX/Pallas port of GDINO PostProcess (has_mask=False path)."""

    def __init__(self, cat_list, num_tokens, num_select=10):
        self.num_select = num_select
        C = len(cat_list)
        self.num_categories = C
        self.c_pad = _round_up(C, 128)

        # Deterministic synthetic positive map (tokenizer-free): category c owns
        # a contiguous 2-token span starting at token 1 + 3*c.
        pm = [[0.0] * num_tokens for _ in range(C)]
        for c in range(C):
            start = 1 + 3 * c
            for t in range(start, min(start + 2, num_tokens)):
                pm[c][t] = 1.0
        pm = jnp.asarray(pm, dtype=jnp.float32)                 # [C, T]
        self.positive_map = pm

        # Hoisted constant prep: row-normalize, transpose, pad C to lane width, cast bf16.
        row_sum = pm.sum(axis=1, keepdims=True)                 # [C, 1]
        safe = jnp.where(row_sum == 0, 1.0, row_sum)
        pm_norm = jnp.where(row_sum != 0, pm / safe, pm)        # [C, T]
        self.pos_map_norm = pm_norm                             # kept for reference/tests
        pm_t = jnp.transpose(pm_norm)                           # [T, C]
        pm_t_pad = jnp.zeros((num_tokens, self.c_pad), jnp.float32).at[:, :C].set(pm_t)
        self.pos_map_t_pad_bf16 = pm_t_pad.astype(jnp.bfloat16)  # [T, C_pad]

    def __call__(self, outputs, target_sizes, image_names, input_sizes=None):
        out_logits = outputs["pred_logits"]                     # [B, Q, T]
        out_bbox = outputs["pred_boxes"]                        # [B, Q, 4] cxcywh in [0,1]
        B, Q, T = out_logits.shape
        C = self.num_categories
        num_select = self.num_select
        assert len(out_logits) == len(target_sizes)
        assert target_sizes.shape[1] == 2

        # --- kernel: sigmoid + matmul over flattened batch, lane-dense C_pad output ---
        M = B * Q
        tile_m = _pick_tile_m(M)
        M_pad = _round_up(M, tile_m)
        logits_flat = out_logits.reshape(M, T).astype(jnp.bfloat16)   # halve HBM read
        if M_pad > M:
            logits_flat = jnp.pad(logits_flat, ((0, M_pad - M), (0, 0)))
        prob_pad = _prob_to_label_flat(logits_flat, self.pos_map_t_pad_bf16, tile_m)
        prob = prob_pad[:M, :C].reshape(B, Q, C)                 # drop pad rows / pad cols

        # --- top-k over flattened (Q*C) ---
        flat = prob.reshape(B, Q * C)
        topk_values, topk_indexes = jax.lax.top_k(flat, num_select)
        scores = topk_values                                     # [B, K]
        topk_boxes = topk_indexes // C                           # [B, K]
        labels = topk_indexes % C                                # [B, K]

        # --- gather FIRST, then convert + scale the tiny [B, K, 4] tensor in plain JAX ---
        idx = jnp.broadcast_to(topk_boxes[..., None], (B, num_select, 4))
        boxes_cxcywh = jnp.take_along_axis(out_bbox.astype(jnp.float32), idx, axis=1)  # [B, K, 4]
        cx = boxes_cxcywh[..., 0]
        cy = boxes_cxcywh[..., 1]
        w = boxes_cxcywh[..., 2]
        h = boxes_cxcywh[..., 3]
        xyxy = jnp.stack([cx - 0.5 * w, cy - 0.5 * h,
                          cx + 0.5 * w, cy + 0.5 * h], axis=-1)  # [B, K, 4]

        img_h = target_sizes[:, 0].astype(jnp.float32)
        img_w = target_sizes[:, 1].astype(jnp.float32)
        scale_fct = jnp.stack([img_w, img_h, img_w, img_h], axis=1)   # [B, 4]
        boxes = xyxy * scale_fct[:, None, :]                          # [B, K, 4]

        results = [
            {"scores": s, "labels": l, "boxes": b, "image_names": n, "image_size": t}
            for s, l, b, n, t in zip(scores, labels, boxes, image_names, target_sizes)
        ]
        return results


# ----------------------------- demo / smoke test ------------------------------

if __name__ == "__main__":
    B, Q, T, C = 2, 16, 32, 8
    num_select = 10

    key = jax.random.PRNGKey(0)
    k1, k2 = jax.random.split(key)
    pred_logits = jax.random.normal(k1, (B, Q, T), dtype=jnp.float32)
    pred_boxes = jax.random.uniform(k2, (B, Q, 4), dtype=jnp.float32,
                                    minval=0.05, maxval=0.95)

    outputs = {"pred_logits": pred_logits, "pred_boxes": pred_boxes}
    target_sizes = jnp.asarray([[480, 640], [512, 512]], dtype=jnp.int32)
    image_names = ["img_0.jpg", "img_1.jpg"]

    cat_list = [f"cat{i}" for i in range(C)]
    post = PostProcessPallas(cat_list, num_tokens=T, num_select=num_select)

    results = post(outputs, target_sizes, image_names)
    for r in results:
        jax.block_until_ready(r["scores"])
        jax.block_until_ready(r["labels"])
        jax.block_until_ready(r["boxes"])

    # --- sanity checks vs. pure-JAX reference (f32 module semantics) ---
    prob_ref = jax.nn.sigmoid(pred_logits) @ post.pos_map_norm.T           # [B, Q, C] f32

    # Direct kernel check (bf16 operands -> loose tolerance).
    M = B * Q
    tile_m = _pick_tile_m(M)
    M_pad = _round_up(M, tile_m)
    lg = pred_logits.reshape(M, T).astype(jnp.bfloat16)
    if M_pad > M:
        lg = jnp.pad(lg, ((0, M_pad - M), (0, 0)))
    prob_kernel = _prob_to_label_flat(lg, post.pos_map_t_pad_bf16, tile_m)[:M, :C].reshape(B, Q, C)
    assert jnp.allclose(prob_kernel, prob_ref, atol=1e-2, rtol=1e-2)

    # End-to-end score check (bf16 rounding -> loose tolerance).
    vals_ref, _ = jax.lax.top_k(prob_ref.reshape(B, -1), num_select)
    scores_all = jnp.stack([r["scores"] for r in results])
    assert jnp.allclose(scores_all, vals_ref, atol=1e-2, rtol=1e-2)

    # Structural checks.
    for r in results:
        assert r["boxes"].shape == (num_select, 4)
        assert bool(jnp.all(jnp.isfinite(r["boxes"])))
        assert bool(jnp.all((r["labels"] >= 0) & (r["labels"] < C)))
        assert bool(jnp.all(r["scores"][:-1] >= r["scores"][1:]))   # sorted descending

    print("KERNEL_OK")
</pallas_src>

<mosaic_0001>
module attributes {stable_mosaic.version = 11 : i64} {
  func.func @_prob_kernel(%arg0: i32, %arg1: memref<16x32xbf16, #tpu.memory_space<vmem>>, %arg2: memref<32x128xbf16, #tpu.memory_space<vmem>>, %arg3: memref<16x128xf32, #tpu.memory_space<vmem>>) attributes {dimension_semantics = [#tpu.dimension_semantics<parallel>], iteration_bounds = array<i64: 2>, scalar_prefetch = 0 : i64, scratch_operands = 0 : i64, tpu.core_type = #tpu.core_type<tc>, window_params = [{transform_indices = @transform_0, window_bounds = array<i64: 16, 32>}, {pipeline_mode = #tpu.pipeline_mode<synchronous>, transform_indices = @transform_1, window_bounds = array<i64: 32, 128>}, {transform_indices = @transform_2, window_bounds = array<i64: 16, 128>}]} {
    %c0 = arith.constant 0 : index
    %c0_0 = arith.constant 0 : index
    %0 = vector.load %arg1[%c0, %c0_0] : memref<16x32xbf16, #tpu.memory_space<vmem>>, vector<16x32xbf16>
    %1 = arith.extf %0 : vector<16x32xbf16> to vector<16x32xf32>
    %2 = arith.negf %1 : vector<16x32xf32>
    %3 = math.exp %2 : vector<16x32xf32>
    %cst = arith.constant 1.000000e+00 : f32
    %4 = vector.broadcast %cst : f32 to vector<16x32xf32>
    %5 = arith.addf %4, %3 : vector<16x32xf32>
    %6 = arith.divf %4, %5 : vector<16x32xf32>
    %7 = arith.truncf %6 : vector<16x32xf32> to vector<16x32xbf16>
    %c0_1 = arith.constant 0 : index
    %c0_2 = arith.constant 0 : index
    %8 = vector.load %arg2[%c0_1, %c0_2] : memref<32x128xbf16, #tpu.memory_space<vmem>>, vector<32x128xbf16>
    %cst_3 = arith.constant dense<0.000000e+00> : vector<16x128xf32>
    %9 = tpu.matmul %7, %8, %cst_3 {dimension_numbers = #tpu.dot_dimension_numbers<[1], [0], [0], [1], [0, 0, 1, 1], [], []>} : vector<16x32xbf16>, vector<32x128xbf16>, vector<16x128xf32> -> vector<16x128xf32>
    %c0_4 = arith.constant 0 : index
    %c0_5 = arith.constant 0 : index
    %10 = vector.load %arg3[%c0_4, %c0_5] : memref<16x128xf32, #tpu.memory_space<vmem>>, vector<16x128xf32>
    tpu.vector_store %arg3[%c0_4, %c0_5], %9 {strides = array<i32>} : memref<16x128xf32, #tpu.memory_space<vmem>>, vector<16x128xf32>,
    return
  }
  func.func @transform_0(%arg0: i32) -> (i32, i32) {
    %c0_i32 = arith.constant 0 : i32
    %c0_i32_0 = arith.constant 0 : i32
    return %arg0, %c0_i32 : i32, i32
  }
  func.func @transform_1(%arg0: i32) -> (i32, i32) {
    %c0_i32 = arith.constant 0 : i32
    %c0_i32_0 = arith.constant 0 : i32
    %c0_i32_1 = arith.constant 0 : i32
    return %c0_i32, %c0_i32_0 : i32, i32
  }
  func.func @transform_2(%arg0: i32) -> (i32, i32) {
    %c0_i32 = arith.constant 0 : i32
    %c0_i32_0 = arith.constant 0 : i32
    return %arg0, %c0_i32 : i32, i32
  }
}

</mosaic_0001>

<bundles_post_ra>
// kernel: tpu_custom_call.1
= control target key start
LH: loop header
LB: loop body
LE: loop exit
PB: predicated region body
PF: predicated region fallthrough
CT: control target
= control target key end

     0   :  { %7 = vsyncpa [#allocation3], 0  ;;  %s830_s0 = inlined_call_operand.hbm [shape: bf16[32,32], index: 0, kind: input, shape index: {}]   ;;  %s831_s1 = inlined_call_operand.hbm [shape: bf16[32,128], index: 1, kind: input, shape index: {}]   ;;  %s832_s2 = inlined_call_operand.hbm [shape: f32[32,128], index: 2, kind: output, shape index: {}]  }
   0x1   :  { %9 = vsyncpa [#allocation3 + $0x1], 0 }
   0x2   :  { %10 = vsyncpa [#allocation6], 0 }
   0x3   :  { %11 = vsyncpa [#allocation4], 0 }
   0x4   :  { %13 = vsyncpa [#allocation4 + $0x1], 0  ;;  %s622_s9 = smov 0   ;;  %s624_s10 = smov 0  }
   0x5   :  { %s626_s11 = smov 0   ;;  %s628_s12 = smov 0  }
   0x6 LB: > { %s643_s13 = sadd.s32 4294967295, %s596_s12   ;;  %s357_s14 = sadd.s32 4294967294, %s596_s12   ;;  %s596_s12 = sphi %s628_s12, %s852_s12   ;;  %s592_s11 = sphi %s626_s11, %s851_s11   ;;  %s588_s10 = sphi %s624_s10, %s850_s10   ;;  %s584_s9 = sphi %s622_s9, %s849_s9  }
   0x7   : > { %p39_p0 = scmp.ne.s32.totalorder %s588_s10, %s584_s9  ;;  %p833_p1 = scmp.eq.s32.totalorder %s643_s13, 0 }
   0x8   : > { %p90_p3 = scmp.eq.s32.totalorder %s357_s14, 1  ;;  %p358_p5 = scmp.ge.s32.totalorder %s596_s12, 1 }
   0x9   : > { %p652_p4 = por %p833_p1, %p39_p0  ;;  %p97_p7 = scmp.lt.s32.totalorder %s596_s12, 3 }
   0xa   : > { %p657_p6 = por %p90_p3, %p39_p0  ;;  %s598_s18 = smov [#allocation5]  }
   0xb   : > { %s836_s15 = scalar_select %p652_p4, 1, 0 }
   0xc   : > { %s837_s16 = scalar_select %p657_p6, 1, 0 }
   0xd   : > { %p662_p8 = pnand %p358_p5, %p97_p7  ;;  %s109_s19 = sshll.u32 %s598_s18, 4  ;;  %s666_s19 = int_to_ptr.vmem [resolvable:$true] %s109_s19 }
   0xe   : > { %s678_s21 = sadd.s32 1, %s596_s12   ;;  %s26_s22 = sadd.s32 1, %s592_s11 }
   0xf   : > { %s838_s17 = scalar_select %p662_p8, 1, 0 }
  0x10   : > { %p403_p9 = pneg %p662_p8  ;;  %s23_s23 = ssub.s32 %s596_s12, %s678_s21 }
  0x11   : > { %s468_s26 = scalar_lea.hbm %s831_s1, 256 }
  0x12   : > { %p673_p11 = pnand %p403_p9, %p833_p1  ;;  %p469_p12 = scmp.ne.s32.totalorder %s831_s1, %s468_s26 }
  0x13   : > { %p475_p5 = scmp.lt.u32.totalorder %s468_s26, %s831_s1 }
  0x14   : > { %p470_p13 = pneg %p673_p11 }
  0x16   : > { %p471_p0 = pnand %p470_p13, %p469_p12 }
  0x18   : > { %p472_p3 = pneg %p471_p0 }
  0x1a   : > { %p477_p7 = pnand %p475_p5, %p472_p3 }
  0x1c   : > { %480 = shalt.err (!%p477_p7)
}
  0x1d   : > { %s481_s3 = scalar_lea.vmem %s666_s19, 256  ;;  %p489_p2 = scmp.lt.s32.totalorder %s666_s19, %s666_s19 }
  0x1e   : > { %p482_p9 = scmp.ne.s32.totalorder %s666_s19, %s481_s3  ;;  %p490_p6 = scmp.lt.s32.totalorder %s481_s3, %s481_s3 }
  0x20   : > { %p484_p10 = pnand %p482_p9, %p470_p13  ;;  %p491_p4 = por %p490_p6, %p489_p2 }
  0x22   : > { %p485_p1 = pneg %p484_p10 }
  0x24   : > { %p492_p8 = pnand %p491_p4, %p485_p1 }
  0x26   : > { %495 = shalt.err (!%p492_p8)
}
  0x27   : > { %s599_s4 = smov 64   ;;  %s600_s5 = smov 4  }
  0x28   : > { %406 = dma.hbm_to_vmem [thread:$0]  (!%p673_p11), %s831_s1, 256, %s666_s19, [#allocation6], %s599_s4, %s599_s4, %s600_s5  }
  0x29   : > { %p24_p1 = scmp.eq.s32.totalorder %s23_s23, 0  ;;  %p33_p2 = scmp.ne.s32.totalorder %s592_s11, %s588_s10 }
  0x2a   : > { %p34_p4 = scmp.eq.s32.totalorder %s596_s12, 0  ;;  %p416_p6 = scmp.lt.s32.totalorder %s596_s12, 2 }
  0x2b   : > { %s712_s8 = scalar_select %p24_p1, %s592_s11, %s26_s22  }
  0x2c   : > { %p35_p8 = por %p34_p4, %p33_p2  ;;  %p840_p10 = scmp.eq.s32.totalorder %s643_s13, 1 }
  0x2d   : > { %s123_s18 = sand.u32 1, %s592_s11   ;;  %s378_s20 = sshll.u32 %s596_s12, 7 }
  0x2e   : > { %p716_p12 = por %p840_p10, %p33_p2  ;;  %s361_s24 = sshll.u32 %s123_s18, 3 }
  0x2f   : > { %s725_s27 = scalar_lea.hbm %s830_s0, %s378_s20  ;;  %s127_s19 = scalar_lea.vmem [#allocation2], %s361_s24 }
  0x30   : > { %s134_s22 = sshll.u32 %s127_s19, 4  ;;  %p727_p11 = pnand %p416_p6, %p35_p8  ;;  %s731_s22 = int_to_ptr.vmem [resolvable:$true] %s134_s22 }
  0x31   : > { %s733_s28 = scalar_lea.sflag [#allocation3], %s123_s18  ;;  %s496_s29 = scalar_lea.hbm %s725_s27, 128 }
  0x32   : > { %p497_p13 = scmp.ne.s32.totalorder %s725_s27, %s496_s29  ;;  %p498_p0 = pneg %p727_p11 }
  0x33   : > { %s501_s6 = scalar_lea.hbm %s830_s0, 256  ;;  %p502_p7 = scmp.lt.u32.totalorder %s725_s27, %s830_s0 }
  0x34   : > { %p499_p3 = pnand %p498_p0, %p497_p13  ;;  %p503_p9 = scmp.lt.u32.totalorder %s501_s6, %s496_s29 }
  0x35   : > { %p505_p2 = scmp.lt.u32.totalorder %s496_s29, %s725_s27 }
  0x36   : > { %p500_p5 = pneg %p499_p3  ;;  %p504_p1 = por %p503_p9, %p502_p7 }
  0x38   : > { %p506_p4 = por %p505_p2, %p504_p1 }
  0x3a   : > { %p507_p6 = pnand %p506_p4, %p500_p5 }
  0x3c   : > { %510 = shalt.err (!%p507_p6)
}
  0x3d   : > { %s511_s18 = scalar_lea.vmem %s731_s22, 128  ;;  %s601_s24 = smov [#allocation2]  }
  0x3e   : > { %p512_p8 = scmp.ne.s32.totalorder %s731_s22, %s511_s18  ;;  %s516_s25 = sshll.u32 %s601_s24, 4  ;;  %s517_s25 = int_to_ptr.vmem [resolvable:$false] %s516_s25 }
  0x3f   : > { %s518_s26 = scalar_lea.vmem %s517_s25, 256  ;;  %p519_p3 = scmp.lt.s32.totalorder %s731_s22, %s517_s25 }
  0x40   : > { %p514_p10 = pnand %p512_p8, %p498_p0  ;;  %p520_p7 = scmp.lt.s32.totalorder %s518_s26, %s511_s18 }
  0x42   : > { %p515_p13 = pneg %p514_p10  ;;  %p521_p9 = por %p520_p7, %p519_p3 }
  0x44   : > { %p522_p1 = pnand %p521_p9, %p515_p13 }
  0x46   : > { %525 = shalt.err (!%p522_p1)
}
  0x47   : > { %410 = dma.hbm_to_vmem [thread:$0]  (!%p727_p11), %s725_s27, 128, %s731_s22, %s733_s28, %s599_s4, %s599_s4, %s600_s5  }
  0x48   : > { %p843_p0 = scmp.ne.s32.totalorder %s838_s17, 0 }
  0x49   : > { %s767_s19 = sand.u32 (!%p843_p0), 1, %s588_s10   ;;  %p844_p5 = scmp.ne.s32.totalorder (!%p843_p0), %s836_s15, 0 }
  0x4a   : > { %146 = sbr.rel (%p843_p0) target bundleno = 346 (0x15a), region = 28  ;;  %s365_s29 = sshll.u32 (!%p843_p0), %s767_s19, 3 }
  0x4b   : > { %s149_s30 = scalar_lea.sflag (!%p843_p0), [#allocation3], %s767_s19  ;;  %s152_s3 = scalar_lea.vmem (!%p843_p0), [#allocation2], %s365_s29 }
  0x51   : > { %571 = dma.done.wait (%p844_p5), %s149_s30, 128  }
  0x52   : > { %573 = vsyncadd (%p844_p5), %s149_s30, 4294967168  ;;  %p845_p2 = scmp.eq.s32.totalorder %s643_s13, 0 }
  0x54   : > { %575 = dma.done.wait (%p845_p2), [#allocation6], 256   ;;  %p846_p11 = pmov %p845_p2 }
  0x55   : > { %v602_v0 = vmov 0.0   ;;  %vm603_vm0 = vmmov 0   ;;  %v458_v1 = vld [vmem:[#allocation5] sm:$0xff]   ;;  %v459_v2 = vld [vmem:[#allocation5 + $0x8] sm:$0xff]   ;;  %v381_v3 = vld [vmem:[%s152_s3] sm:$0xff]   ;;  %vm213_vm1 = vcmask 261120  }
  0x56   : > { %577 = vsyncadd (%p846_p11), [#allocation6], 4294967040  ;;  %387 = vmatprep.subr.bf16.mxu0 %v602_v0  ;;  %391 = vmatprep.mubr.msk.bf16.mxu0 %vm603_vm0, %v602_v0  ;;  %v382_v4 = vunpack.c.l.bf16 %v381_v3  ;;  %v383_v5 = vunpack.c.h.bf16 %v381_v3  ;;  %s367_s15 = sshll.u32 %s767_s19, 4  ;;  %s379_s5 = sshll.u32 %s643_s13, 8 }
  0x57   : > { %388 = vmatpush3.bf16.msra.mxu0 %v458_v1  ;;  %s176_s17 = scalar_lea.vmem [#allocation7], %s367_s15  ;;  %s786_s23 = scalar_lea.hbm %s832_s2, %s379_s5 }
  0x58   : > { %389 = vmatprep.subr.bf16.mxu0 %v602_v0  ;;  %v368_v6 = vmul.f32 -1.442695, %v382_v4  ;;  %v369_v7 = vmul.f32 -1.442695, %v383_v5  ;;  %s274_s4 = sshll.u32 %s176_s17, 4  ;;  %s261_s28 = scalar_lea.sflag [#allocation4], %s767_s19  ;;  %s781_s4 = int_to_ptr.vmem [resolvable:$true] %s274_s4 }
  0x59   : > { %s526_s6 = scalar_lea.vmem %s781_s4, 256  ;;  %s604_s13 = smov [#allocation7]  }
  0x5a   : > { %460 = vpow2.f32 %v368_v6  ;;  %p527_p4 = scmp.ne.s32.totalorder %s781_s4, %s526_s6  ;;  %s530_s7 = sshll.u32 %s604_s13, 4  ;;  %s531_s7 = int_to_ptr.vmem [resolvable:$false] %s530_s7 }
  0x5b   : > { %390 = vmatpush3.bf16.msra.mxu0 %v459_v2  ;;  %462 = vpow2.f32 %v369_v7  ;;  %s532_s20 = scalar_lea.vmem %s531_s7, 512  ;;  %p533_p10 = scmp.lt.s32.totalorder %s781_s4, %s531_s7 }
  0x5c   : > { %p528_p6 = pnand %p527_p4, %p716_p12  ;;  %p534_p13 = scmp.lt.s32.totalorder %s532_s20, %s526_s6 }
  0x5e   : > { %p529_p8 = pneg %p528_p6  ;;  %p535_p3 = por %p534_p13, %p533_p10 }
  0x60   : > { %p536_p7 = pnand %p535_p3, %p529_p8 }
  0x64   : > { %v461_v8 = vpop.eup %460 }
  0x65   : > { %v463_v9 = vpop.eup %462  ;;  %v190_v10 = vadd.f32 1.0, %v461_v8 }
  0x66   : > { %v191_v11 = vadd.f32 1.0, %v463_v9 }
  0x67   : > { %464 = vrcp.f32 %v190_v10 }
  0x68   : > { %466 = vrcp.f32 %v191_v11 }
  0x71   : > { %v465_v12 = vpop.eup %464 }
  0x72   : > { %v467_v13 = vpop.eup %466 }
  0x73   : > { %v196_v14 = vpack.c.bf16 %v467_v13, %v465_v12 }
  0x75   : > { %392 = vmatmul.mubr.msk.bf16.vlgmr.msra.gmra.mrb[0].mxu0 %vm213_vm1, %v196_v14 }
 0x148   : > { %v251_v15 = vpop.f32.mrb[0].mxu0 }
 0x149   : > { %258 = vst [vmem:[%s176_s17] sm:$0xff] %v251_v15  ;;  %v393_v16 = vpop.f32.mrb[1].mxu0 }
 0x14a   : > { %v254_v17 = vpop.f32.mrb[2].mxu0 }
 0x14b   : > { %259 = vst [vmem:[%s176_s17 + $0x8] sm:$0xff] %v254_v17  ;;  %v394_v18 = vpop.f32.mrb[3].mxu0 }
 0x14c   : > { %539 = shalt.err (!%p536_p7)
}
 0x14d   : > { %s540_s18 = scalar_lea.hbm %s786_s23, 256  ;;  %s544_s26 = scalar_lea.hbm %s832_s2, 512 }
 0x14e   : > { %p541_p9 = scmp.ne.s32.totalorder %s786_s23, %s540_s18  ;;  %p545_p5 = scmp.lt.u32.totalorder %s786_s23, %s832_s2 }
 0x14f   : > { %p546_p2 = scmp.lt.u32.totalorder %s544_s26, %s540_s18  ;;  %p548_p4 = scmp.lt.u32.totalorder %s540_s18, %s786_s23 }
 0x150   : > { %p542_p1 = pnand %p541_p9, %p716_p12 }
 0x151   : > { %p547_p11 = por %p546_p2, %p545_p5 }
 0x152   : > { %p543_p0 = pneg %p542_p1 }
 0x153   : > { %p549_p6 = por %p548_p4, %p547_p11 }
 0x155   : > { %p550_p8 = pnand %p549_p6, %p543_p0 }
 0x157   : > { %553 = shalt.err (!%p550_p8)
}
 0x158   : > { %s605_s3 = smov 128   ;;  %s606_s15 = smov 8  }
 0x159   : > { %401 = dma.vmem_to_hbm [thread:$0]  (%p716_p12), %s781_s4, 256, %s786_s23, %s261_s28, %s605_s3, %s605_s3, %s606_s15  }
 0x15a PF: > { %s289_s17 = sand.u32 1, %s584_s9   ;;  %p847_p10 = scmp.ne.s32.totalorder %s837_s16, 0 }
 0x15b   : > { %p848_p13 = scmp.ge.s32.totalorder %s596_s12, 2  ;;  %s290_s5 = scalar_lea.sflag [#allocation4], %s289_s17 }
 0x15d   : > { %p412_p3 = pnand %p848_p13, %p847_p10 }
 0x15f   : > { %579 = dma.done.wait (!%p412_p3), %s290_s5, 256  }
 0x160   : > { %581 = vsyncadd (!%p412_p3), %s290_s5, 4294967040  ;;  %p16_p7 = scmp.ge.s32.totalorder %s678_s21, 4   ;;  %s849_s9 = smov %s588_s10 }
 0x161   : > { %s850_s10 = smov %s592_s11  ;;  %s851_s11 = smov %s712_s8 }
 0x162   : > { %s852_s12 = smov %s678_s21  ;;  %18 = sbr.rel (!%p16_p7) target bundleno = 6 (0x6), region = 77 }
 0x169   :  { %295 = vsyncpa [#allocation3], 1 }
 0x16a   :  { %297 = vsyncpa [#allocation3 + $0x1], 1 }
 0x16b   :  { %298 = vsyncpa [#allocation6], 1 }
 0x16c   :  { %299 = vsyncpa [#allocation4], 1 }
 0x16d   :  { %301 = vsyncpa [#allocation4 + $0x1], 1 }

</bundles_post_ra>
